<compile_context>
chip_gen: v7x
topology: tpu7x:2x2x1
jax: 0.10.0
libtpu: 0.0.40
codegen_flags: <defaults>
</compile_context>

<pallas_src>
import jax
import jax.numpy as jnp
from jax.experimental import pallas as pl
from jax.experimental.pallas import tpu as pltpu


def _identity_dma_kernel(x_hbm, o_hbm, sem):
    # GetLoss.forward(loss) == loss.
    # Single HBM -> HBM DMA of the whole array; no VMEM round-trip.
    cp = pltpu.make_async_copy(x_hbm, o_hbm, sem)
    cp.start()
    cp.wait()


def _pallas_identity(loss: jax.Array) -> jax.Array:
    """One pallas_call that copies `loss` HBM->HBM (bit-exact identity)."""
    if loss.size == 0:
        return loss
    return pl.pallas_call(
        _identity_dma_kernel,
        out_shape=jax.ShapeDtypeStruct(loss.shape, loss.dtype),
        in_specs=[pl.BlockSpec(memory_space=pl.ANY)],
        out_specs=pl.BlockSpec(memory_space=pl.ANY),
        scratch_shapes=[pltpu.SemaphoreType.DMA(())],
    )(loss)


@jax.custom_vjp
def get_loss_pallas(loss: jax.Array) -> jax.Array:
    """Pallas-backed GetLoss()(loss): identity via a single HBM->HBM DMA."""
    return _pallas_identity(loss)


def _get_loss_fwd(loss):
    return _pallas_identity(loss), None


def _get_loss_bwd(_, g):
    # d(loss)/d(loss) == identity cotangent.
    return (g,)


get_loss_pallas.defvjp(_get_loss_fwd, _get_loss_bwd)


def get_loss(loss: jax.Array) -> jax.Array:
    """Equivalent of GetLoss()(loss).

    GetLoss.forward is a literal identity, so the fastest (and exact) TPU
    implementation is no kernel at all: zero HBM traffic, zero launch
    overhead, fully differentiable.  Use `get_loss_pallas` if a pallas_call
    is explicitly required.
    """
    return loss


if __name__ == "__main__":
    key = jax.random.PRNGKey(0)
    k0, k1 = jax.random.split(key, 2)

    # Module-spec example: NCHW per-pixel loss map, small shape.
    x = jax.random.normal(k0, (2, 4, 16, 16), dtype=jnp.float32)

    # 1) Default path: kernel elided (pure identity, zero HBM traffic).
    y_fast = jax.block_until_ready(get_loss(x))
    assert y_fast.shape == x.shape and y_fast.dtype == x.dtype
    assert bool(jnp.array_equal(y_fast, x)), "identity mismatch (fast path)"

    # 2) Pallas path: run the HBM->HBM DMA kernel once and verify bit-exactness.
    y_pallas = jax.block_until_ready(get_loss_pallas(x))
    assert y_pallas.shape == x.shape and y_pallas.dtype == x.dtype
    assert bool(jnp.array_equal(y_pallas, x)), "identity mismatch (pallas path)"

    # 3) Second shape/dtype through the kernel (non-aligned dims are fine: no
    #    BlockSpec tiling constraints on the HBM->HBM DMA path).
    x_bf = jax.random.normal(k1, (3, 5, 17), dtype=jnp.float32).astype(jnp.bfloat16)
    y_bf = jax.block_until_ready(get_loss_pallas(x_bf))
    assert y_bf.shape == x_bf.shape and y_bf.dtype == x_bf.dtype
    assert bool(jnp.array_equal(y_bf, x_bf)), "identity mismatch (bf16 pallas path)"

    # 4) Autodiff flows through the Pallas path (custom_vjp identity cotangent).
    g = jax.block_until_ready(
        jax.grad(lambda t: jnp.sum(get_loss_pallas(t)))(x)
    )
    assert bool(jnp.array_equal(g, jnp.ones_like(x))), "grad mismatch (pallas path)"

    print("KERNEL_OK")
</pallas_src>

<mosaic_0001>
module attributes {stable_mosaic.version = 11 : i64} {
  func.func @_identity_dma_kernel(%arg0: memref<2x4x16x16xf32, #tpu.memory_space<any>>, %arg1: memref<2x4x16x16xf32, #tpu.memory_space<any>>, %arg2: memref<!tpu.dma_semaphore, #tpu.memory_space<semaphore_mem>>) attributes {dimension_semantics = [], scalar_prefetch = 0 : i64, scratch_operands = 1 : i64, tpu.core_type = #tpu.core_type<tc>} {
    tpu.enqueue_dma source(%arg0 : memref<2x4x16x16xf32, #tpu.memory_space<any>>) target(%arg1 : memref<2x4x16x16xf32, #tpu.memory_space<any>>) target_semaphore(%arg2 : memref<!tpu.dma_semaphore, #tpu.memory_space<semaphore_mem>>)
    tpu.wait_dma2 semaphore(%arg2 : memref<!tpu.dma_semaphore, #tpu.memory_space<semaphore_mem>>) src(%arg0 : memref<2x4x16x16xf32, #tpu.memory_space<any>>) dst(%arg1 : memref<2x4x16x16xf32, #tpu.memory_space<any>>)
    return
  }
}

</mosaic_0001>

<bundles_post_ra>
// kernel: tpu_custom_call.1
= control target key start
LH: loop header
LB: loop body
LE: loop exit
PB: predicated region body
PF: predicated region fallthrough
CT: control target
= control target key end

     0   :  { %s36_s6 = smov [#allocation2]   ;;  %s37_s7 = smov [#allocation3]   ;;  %s55_s0 = inlined_call_operand.hbm [shape: f32[2,4,16,16], index: 0, kind: input, shape index: {}]   ;;  %s56_s1 = inlined_call_operand.hbm [shape: f32[2,4,16,16], index: 1, kind: output, shape index: {}]  }
   0x1   :  { %s38_s8 = smov 0  }
   0x2   :  { %18 = dma.general %s55_s0, 2048, %s56_s1, %s36_s6, %s37_s7, [#allocation4], %s38_s8, 0  }
   0x3   :  { %34 = dma.done.wait [#allocation2], 2048 }
   0x4   :  { %35 = vsyncadd [#allocation2], 4294965248 }
   0x5   :  { %24 = vsyncmov [#allocation2] }
   0x8   :  { %s25_s13 = vpop.sfrf %24 }
   0x9   :  { %p30_p0 = scmp.ne.s32.totalorder %s25_s13, 0 }
   0xb   :  { %29 = shalt.err (%p30_p0)  }

</bundles_post_ra>
